<compile_context>
chip_gen: v6e
topology: v6e:2x2x1
jax: 0.10.0
libtpu: 0.0.40
codegen_flags: <defaults>
</compile_context>

<pallas_src>
import math

import jax
import jax.numpy as jnp
from jax.experimental import pallas as pl
from jax.experimental.pallas import tpu as pltpu

# ---- model dims (small, consistent with the module's forward) ----
BATCH = 2
NODES = 8
HIDDEN = 32
NUM_HEADS = 4
HEAD_DIM = HIDDEN // NUM_HEADS
ROW_TILE = 8            # query-row tile (grid axis); BN must be divisible
LN_EPS = 1e-12          # BERT default
NEG_INF = -1e9


def gatbert_attention_kernel(xq_ref, xkv_ref, bias_ref,
                             wq_ref, wkv_ref, bq_ref, bkv_ref,
                             wo_ref, bo_ref, gamma_ref, beta_ref,
                             out_ref):
    """Fused: edge-masked MHA + output dense + residual + LayerNorm.

    xq_ref:   (TQ, H)  f32   query-row tile of node states (grid-tiled)
    xkv_ref:  (BN, H)  f32   all node states (invariant block, fetched once)
    bias_ref: (TQ, BN) f32   additive attention bias tile (0 = edge/self-loop,
                             -1e9 = no edge or cross-batch pair)
    wq_ref:   (H, H)   bf16  Q weight, softmax scale folded in
    wkv_ref:  (H, 2H)  bf16  contiguous K|V weight
    bq_ref:   (1, H)   f32   Q bias (scaled);  bkv_ref: (1, 2H) f32 K|V bias
    wo_ref:   (H, H)   bf16  output projection
    bo_ref, gamma_ref, beta_ref: (1, H) f32
    out_ref:  (TQ, H)  f32
    """
    xq = xq_ref[...]                                        # (TQ, H) f32
    xkv = xkv_ref[...]                                      # (BN, H) f32
    bias = bias_ref[...]                                    # (TQ, BN) f32

    # --- projections: bf16 MXU operands, f32 accumulation; scale in Wq/bq ---
    q2d = jnp.dot(xq.astype(jnp.bfloat16), wq_ref[...],
                  preferred_element_type=jnp.float32) + bq_ref[...]      # (TQ, H)
    kv2d = jnp.dot(xkv.astype(jnp.bfloat16), wkv_ref[...],
                   preferred_element_type=jnp.float32) + bkv_ref[...]    # (BN, 2H)

    q_b = q2d.astype(jnp.bfloat16)
    k_b = kv2d[:, :HIDDEN].astype(jnp.bfloat16)
    v_b = kv2d[:, HIDDEN:].astype(jnp.bfloat16)

    # --- per-head attention; head slices are static lane slices (in-register) ---
    ctx_heads = []
    for h in range(NUM_HEADS):                              # static, tiny
        sl = slice(h * HEAD_DIM, (h + 1) * HEAD_DIM)
        s = jnp.einsum('qd,kd->qk', q_b[:, sl], k_b[:, sl],
                       preferred_element_type=jnp.float32) + bias        # (TQ, BN) f32
        m = jnp.max(s, axis=-1, keepdims=True)
        p = jnp.exp(s - m)                                               # f32
        l = jnp.sum(p, axis=-1, keepdims=True)                           # (TQ, 1)
        ctx = jnp.dot(p.astype(jnp.bfloat16), v_b[:, sl],
                      preferred_element_type=jnp.float32)                # (TQ, HD)
        # normalize AFTER the PV matmul (same math, touches the small tensor)
        ctx_heads.append(ctx * pl.reciprocal(l, approx=True))

    ctx = jnp.concatenate(ctx_heads, axis=-1)                # (TQ, H) lane-major

    # --- single output projection + residual ---
    y = jnp.dot(ctx.astype(jnp.bfloat16), wo_ref[...],
                preferred_element_type=jnp.float32) + bo_ref[...] + xq   # (TQ, H)

    # --- LayerNorm (BERT: biased variance, eps=1e-12), f32 ---
    mean = jnp.mean(y, axis=-1, keepdims=True)
    var = jnp.mean((y - mean) ** 2, axis=-1, keepdims=True)
    out_ref[...] = ((y - mean) * jax.lax.rsqrt(var + LN_EPS)
                    * gamma_ref[...] + beta_ref[...])


@jax.jit
def gatbert_attention(hidden_states, att_bias, params):
    """hidden_states: (B, N, H) f32; att_bias: (B*N, B*N) f32 additive mask."""
    B, N, H = hidden_states.shape
    BN = B * N
    TQ = ROW_TILE
    scale = 1.0 / math.sqrt(HEAD_DIM)

    # Fold the softmax scale into Q; contiguous K|V block; bf16 MXU weights.
    wq = (params["wq"] * scale).astype(jnp.bfloat16)                   # (H, H)
    bq = params["bq"] * scale                                          # (1, H) f32
    wkv = jnp.concatenate([params["wk"], params["wv"]], axis=1)        # (H, 2H)
    wkv = wkv.astype(jnp.bfloat16)
    bkv = jnp.concatenate([params["bk"], params["bv"]], axis=1)        # (1, 2H) f32
    wo = params["wo"].astype(jnp.bfloat16)                             # (H, H)

    x2d = hidden_states.reshape(BN, H)

    out2d = pl.pallas_call(
        gatbert_attention_kernel,
        out_shape=jax.ShapeDtypeStruct((BN, H), jnp.float32),
        grid_spec=pltpu.PrefetchScalarGridSpec(
            num_scalar_prefetch=0,
            grid=(BN // TQ,),                       # parallel query-row tiles
            in_specs=[
                pl.BlockSpec((TQ, H), lambda i: (i, 0)),        # query-row tile
                pl.BlockSpec((BN, H), lambda i: (0, 0)),        # full rows for K/V
                pl.BlockSpec((TQ, BN), lambda i: (i, 0)),       # bias tile
                pl.BlockSpec((H, H), lambda i: (0, 0)),         # Wq (bf16, scaled)
                pl.BlockSpec((H, 2 * H), lambda i: (0, 0)),     # Wkv (bf16)
                pl.BlockSpec((1, H), lambda i: (0, 0)),         # bq
                pl.BlockSpec((1, 2 * H), lambda i: (0, 0)),     # bkv
                pl.BlockSpec((H, H), lambda i: (0, 0)),         # Wo (bf16)
                pl.BlockSpec((1, H), lambda i: (0, 0)),         # bo
                pl.BlockSpec((1, H), lambda i: (0, 0)),         # gamma
                pl.BlockSpec((1, H), lambda i: (0, 0)),         # beta
            ],
            out_specs=pl.BlockSpec((TQ, H), lambda i: (i, 0)),
        ),
        compiler_params=pltpu.CompilerParams(
            dimension_semantics=("parallel",)),
    )(x2d, x2d, att_bias, wq, wkv, bq, bkv, wo,
      params["bo"], params["gamma"], params["beta"])

    return out2d.reshape(B, N, H)


def build_attention_bias(edge_indices, batch, nodes):
    """edge_indices: (E, 3) int32 rows of (batch_idx, src_node, tgt_node).

    Returns an additive (B*N, B*N) float32 bias: 0.0 where src may attend to
    tgt (same batch element, graph edge or self-loop), -1e9 everywhere else
    (including all cross-batch pairs). Self-loops are always allowed."""
    adj = jnp.zeros((batch, nodes, nodes), jnp.float32)
    b, s, t = edge_indices[:, 0], edge_indices[:, 1], edge_indices[:, 2]
    adj = adj.at[b, s, t].set(1.0)
    adj = jnp.maximum(adj, jnp.eye(nodes, dtype=jnp.float32)[None])
    bias = jnp.full((batch * nodes, batch * nodes), NEG_INF, jnp.float32)
    for bb in range(batch):  # small static loop
        blk = (1.0 - adj[bb]) * NEG_INF
        bias = bias.at[bb * nodes:(bb + 1) * nodes,
                       bb * nodes:(bb + 1) * nodes].set(blk)
    return bias


def init_params(key, hidden):
    keys = jax.random.split(key, 5)
    std = 0.02
    return {
        "wq": std * jax.random.normal(keys[0], (hidden, hidden), jnp.float32),
        "bq": jnp.zeros((1, hidden), jnp.float32),
        "wk": std * jax.random.normal(keys[1], (hidden, hidden), jnp.float32),
        "bk": jnp.zeros((1, hidden), jnp.float32),
        "wv": std * jax.random.normal(keys[2], (hidden, hidden), jnp.float32),
        "bv": jnp.zeros((1, hidden), jnp.float32),
        "wo": std * jax.random.normal(keys[3], (hidden, hidden), jnp.float32),
        "bo": jnp.zeros((1, hidden), jnp.float32),
        "gamma": jnp.ones((1, hidden), jnp.float32),
        "beta": jnp.zeros((1, hidden), jnp.float32),
    }


if __name__ == "__main__":
    key = jax.random.PRNGKey(0)
    k_x, k_p = jax.random.split(key, 2)

    hidden_states = jax.random.normal(k_x, (BATCH, NODES, HIDDEN), jnp.float32)

    # Deterministic sparse edge list: (batch, src, tgt) triples — ring graph.
    srcs = jnp.arange(NODES, dtype=jnp.int32)
    tgts = (srcs + 1) % NODES
    edge_list = []
    for b in range(BATCH):
        edge_list.append(jnp.stack(
            [jnp.full((NODES,), b, jnp.int32), srcs, tgts], axis=-1))
    edge_indices = jnp.concatenate(edge_list, axis=0)        # (B*N, 3)
    node_type_ids = jnp.zeros((BATCH, NODES), jnp.int32)      # unused (see TODO)

    att_bias = build_attention_bias(edge_indices, BATCH, NODES)
    params = init_params(k_p, HIDDEN)

    out = gatbert_attention(hidden_states, att_bias, params)
    jax.block_until_ready(out)
    assert out.shape == (BATCH, NODES, HIDDEN)
    assert bool(jnp.all(jnp.isfinite(out)))
    print("KERNEL_OK")
</pallas_src>

<mosaic_0001>
module attributes {stable_mosaic.version = 11 : i64} {
  func.func @gatbert_attention_kernel(%arg0: i32, %arg1: memref<8x32xf32, #tpu.memory_space<vmem>>, %arg2: memref<16x32xf32, #tpu.memory_space<vmem>>, %arg3: memref<8x16xf32, #tpu.memory_space<vmem>>, %arg4: memref<32x32xbf16, #tpu.memory_space<vmem>>, %arg5: memref<32x64xbf16, #tpu.memory_space<vmem>>, %arg6: memref<1x32xf32, #tpu.memory_space<vmem>>, %arg7: memref<1x64xf32, #tpu.memory_space<vmem>>, %arg8: memref<32x32xbf16, #tpu.memory_space<vmem>>, %arg9: memref<1x32xf32, #tpu.memory_space<vmem>>, %arg10: memref<1x32xf32, #tpu.memory_space<vmem>>, %arg11: memref<1x32xf32, #tpu.memory_space<vmem>>, %arg12: memref<8x32xf32, #tpu.memory_space<vmem>>) attributes {dimension_semantics = [#tpu.dimension_semantics<parallel>], iteration_bounds = array<i64: 2>, scalar_prefetch = 0 : i64, scratch_operands = 0 : i64, tpu.core_type = #tpu.core_type<tc>, window_params = [{transform_indices = @transform_0, window_bounds = array<i64: 8, 32>}, {pipeline_mode = #tpu.pipeline_mode<synchronous>, transform_indices = @transform_1, window_bounds = array<i64: 16, 32>}, {transform_indices = @transform_2, window_bounds = array<i64: 8, 16>}, {pipeline_mode = #tpu.pipeline_mode<synchronous>, transform_indices = @transform_3, window_bounds = array<i64: 32, 32>}, {pipeline_mode = #tpu.pipeline_mode<synchronous>, transform_indices = @transform_4, window_bounds = array<i64: 32, 64>}, {pipeline_mode = #tpu.pipeline_mode<synchronous>, transform_indices = @transform_5, window_bounds = array<i64: 1, 32>}, {pipeline_mode = #tpu.pipeline_mode<synchronous>, transform_indices = @transform_6, window_bounds = array<i64: 1, 64>}, {pipeline_mode = #tpu.pipeline_mode<synchronous>, transform_indices = @transform_7, window_bounds = array<i64: 32, 32>}, {pipeline_mode = #tpu.pipeline_mode<synchronous>, transform_indices = @transform_8, window_bounds = array<i64: 1, 32>}, {pipeline_mode = #tpu.pipeline_mode<synchronous>, transform_indices = @transform_9, window_bounds = array<i64: 1, 32>}, {pipeline_mode = #tpu.pipeline_mode<synchronous>, transform_indices = @transform_10, window_bounds = array<i64: 1, 32>}, {transform_indices = @transform_11, window_bounds = array<i64: 8, 32>}]} {
    %c0 = arith.constant 0 : index
    %c0_0 = arith.constant 0 : index
    %0 = vector.load %arg1[%c0, %c0_0] : memref<8x32xf32, #tpu.memory_space<vmem>>, vector<8x32xf32>
    %c0_1 = arith.constant 0 : index
    %c0_2 = arith.constant 0 : index
    %1 = vector.load %arg2[%c0_1, %c0_2] : memref<16x32xf32, #tpu.memory_space<vmem>>, vector<16x32xf32>
    %c0_3 = arith.constant 0 : index
    %c0_4 = arith.constant 0 : index
    %2 = vector.load %arg3[%c0_3, %c0_4] : memref<8x16xf32, #tpu.memory_space<vmem>>, vector<8x16xf32>
    %3 = arith.truncf %0 : vector<8x32xf32> to vector<8x32xbf16>
    %c0_5 = arith.constant 0 : index
    %c0_6 = arith.constant 0 : index
    %4 = vector.load %arg4[%c0_5, %c0_6] : memref<32x32xbf16, #tpu.memory_space<vmem>>, vector<32x32xbf16>
    %cst = arith.constant dense<0.000000e+00> : vector<8x32xf32>
    %5 = tpu.matmul %3, %4, %cst {dimension_numbers = #tpu.dot_dimension_numbers<[1], [0], [0], [1], [0, 0, 1, 1], [], []>} : vector<8x32xbf16>, vector<32x32xbf16>, vector<8x32xf32> -> vector<8x32xf32>
    %c0_7 = arith.constant 0 : index
    %c0_8 = arith.constant 0 : index
    %6 = vector.load %arg6[%c0_7, %c0_8] : memref<1x32xf32, #tpu.memory_space<vmem>>, vector<1x32xf32>
    %7 = vector.broadcast %6 : vector<1x32xf32> to vector<8x32xf32>
    %8 = arith.addf %5, %7 : vector<8x32xf32>
    %9 = arith.truncf %1 : vector<16x32xf32> to vector<16x32xbf16>
    %c0_9 = arith.constant 0 : index
    %c0_10 = arith.constant 0 : index
    %10 = vector.load %arg5[%c0_9, %c0_10] : memref<32x64xbf16, #tpu.memory_space<vmem>>, vector<32x64xbf16>
    %cst_11 = arith.constant dense<0.000000e+00> : vector<16x64xf32>
    %11 = tpu.matmul %9, %10, %cst_11 {dimension_numbers = #tpu.dot_dimension_numbers<[1], [0], [0], [1], [0, 0, 1, 1], [], []>} : vector<16x32xbf16>, vector<32x64xbf16>, vector<16x64xf32> -> vector<16x64xf32>
    %c0_12 = arith.constant 0 : index
    %c0_13 = arith.constant 0 : index
    %12 = vector.load %arg7[%c0_12, %c0_13] : memref<1x64xf32, #tpu.memory_space<vmem>>, vector<1x64xf32>
    %13 = vector.broadcast %12 : vector<1x64xf32> to vector<16x64xf32>
    %14 = arith.addf %11, %13 : vector<16x64xf32>
    %15 = arith.truncf %8 : vector<8x32xf32> to vector<8x32xbf16>
    %16 = vector.extract_strided_slice %14 {offsets = [0, 0], sizes = [16, 32], strides = [1, 1]} : vector<16x64xf32> to vector<16x32xf32>
    %17 = arith.truncf %16 : vector<16x32xf32> to vector<16x32xbf16>
    %18 = vector.extract_strided_slice %14 {offsets = [0, 32], sizes = [16, 32], strides = [1, 1]} : vector<16x64xf32> to vector<16x32xf32>
    %19 = arith.truncf %18 : vector<16x32xf32> to vector<16x32xbf16>
    %20 = vector.extract_strided_slice %15 {offsets = [0, 0], sizes = [8, 8], strides = [1, 1]} : vector<8x32xbf16> to vector<8x8xbf16>
    %21 = vector.extract_strided_slice %17 {offsets = [0, 0], sizes = [16, 8], strides = [1, 1]} : vector<16x32xbf16> to vector<16x8xbf16>
    "tpu.trace_start"() <{level = 10 : i32, message = "qd,kd->qk"}> : () -> ()
    %cst_14 = arith.constant dense<0.000000e+00> : vector<8x16xf32>
    %22 = tpu.matmul %20, %21, %cst_14 {dimension_numbers = #tpu.dot_dimension_numbers<[1], [1], [0], [0], [0, 0, 1, 0], [], []>} : vector<8x8xbf16>, vector<16x8xbf16>, vector<8x16xf32> -> vector<8x16xf32>
    "tpu.trace_stop"() : () -> ()
    %23 = arith.addf %22, %2 : vector<8x16xf32>
    %cst_15 = arith.constant dense<0xFF800000> : vector<8xf32>
    %24 = vector.multi_reduction <maximumf>, %23, %cst_15 [1] : vector<8x16xf32> to vector<8xf32>
    %25 = vector.shape_cast %24 : vector<8xf32> to vector<8x1xf32>
    %26 = vector.broadcast %25 : vector<8x1xf32> to vector<8x16xf32>
    %27 = arith.subf %23, %26 : vector<8x16xf32>
    %28 = math.exp %27 : vector<8x16xf32>
    %cst_16 = arith.constant dense<0.000000e+00> : vector<8xf32>
    %29 = vector.multi_reduction <add>, %28, %cst_16 [1] : vector<8x16xf32> to vector<8xf32>
    %30 = vector.shape_cast %29 : vector<8xf32> to vector<8x1xf32>
    %31 = arith.truncf %28 : vector<8x16xf32> to vector<8x16xbf16>
    %32 = vector.extract_strided_slice %19 {offsets = [0, 0], sizes = [16, 8], strides = [1, 1]} : vector<16x32xbf16> to vector<16x8xbf16>
    %cst_17 = arith.constant dense<0.000000e+00> : vector<8x8xf32>
    %33 = tpu.matmul %31, %32, %cst_17 {dimension_numbers = #tpu.dot_dimension_numbers<[1], [0], [0], [1], [0, 0, 1, 1], [], []>} : vector<8x16xbf16>, vector<16x8xbf16>, vector<8x8xf32> -> vector<8x8xf32>
    %34 = tpu.reciprocal %30 {approx = true} : vector<8x1xf32> -> vector<8x1xf32>
    %35 = vector.broadcast %34 : vector<8x1xf32> to vector<8x8xf32>
    %36 = arith.mulf %33, %35 : vector<8x8xf32>
    %37 = vector.extract_strided_slice %15 {offsets = [0, 8], sizes = [8, 8], strides = [1, 1]} : vector<8x32xbf16> to vector<8x8xbf16>
    %38 = vector.extract_strided_slice %17 {offsets = [0, 8], sizes = [16, 8], strides = [1, 1]} : vector<16x32xbf16> to vector<16x8xbf16>
    "tpu.trace_start"() <{level = 10 : i32, message = "qd,kd->qk"}> : () -> ()
    %cst_18 = arith.constant dense<0.000000e+00> : vector<8x16xf32>
    %39 = tpu.matmul %37, %38, %cst_18 {dimension_numbers = #tpu.dot_dimension_numbers<[1], [1], [0], [0], [0, 0, 1, 0], [], []>} : vector<8x8xbf16>, vector<16x8xbf16>, vector<8x16xf32> -> vector<8x16xf32>
    "tpu.trace_stop"() : () -> ()
    %40 = arith.addf %39, %2 : vector<8x16xf32>
    %cst_19 = arith.constant dense<0xFF800000> : vector<8xf32>
    %41 = vector.multi_reduction <maximumf>, %40, %cst_19 [1] : vector<8x16xf32> to vector<8xf32>
    %42 = vector.shape_cast %41 : vector<8xf32> to vector<8x1xf32>
    %43 = vector.broadcast %42 : vector<8x1xf32> to vector<8x16xf32>
    %44 = arith.subf %40, %43 : vector<8x16xf32>
    %45 = math.exp %44 : vector<8x16xf32>
    %cst_20 = arith.constant dense<0.000000e+00> : vector<8xf32>
    %46 = vector.multi_reduction <add>, %45, %cst_20 [1] : vector<8x16xf32> to vector<8xf32>
    %47 = vector.shape_cast %46 : vector<8xf32> to vector<8x1xf32>
    %48 = arith.truncf %45 : vector<8x16xf32> to vector<8x16xbf16>
    %49 = vector.extract_strided_slice %19 {offsets = [0, 8], sizes = [16, 8], strides = [1, 1]} : vector<16x32xbf16> to vector<16x8xbf16>
    %cst_21 = arith.constant dense<0.000000e+00> : vector<8x8xf32>
    %50 = tpu.matmul %48, %49, %cst_21 {dimension_numbers = #tpu.dot_dimension_numbers<[1], [0], [0], [1], [0, 0, 1, 1], [], []>} : vector<8x16xbf16>, vector<16x8xbf16>, vector<8x8xf32> -> vector<8x8xf32>
    %51 = tpu.reciprocal %47 {approx = true} : vector<8x1xf32> -> vector<8x1xf32>
    %52 = vector.broadcast %51 : vector<8x1xf32> to vector<8x8xf32>
    %53 = arith.mulf %50, %52 : vector<8x8xf32>
    %54 = vector.extract_strided_slice %15 {offsets = [0, 16], sizes = [8, 8], strides = [1, 1]} : vector<8x32xbf16> to vector<8x8xbf16>
    %55 = vector.extract_strided_slice %17 {offsets = [0, 16], sizes = [16, 8], strides = [1, 1]} : vector<16x32xbf16> to vector<16x8xbf16>
    "tpu.trace_start"() <{level = 10 : i32, message = "qd,kd->qk"}> : () -> ()
    %cst_22 = arith.constant dense<0.000000e+00> : vector<8x16xf32>
    %56 = tpu.matmul %54, %55, %cst_22 {dimension_numbers = #tpu.dot_dimension_numbers<[1], [1], [0], [0], [0, 0, 1, 0], [], []>} : vector<8x8xbf16>, vector<16x8xbf16>, vector<8x16xf32> -> vector<8x16xf32>
    "tpu.trace_stop"() : () -> ()
    %57 = arith.addf %56, %2 : vector<8x16xf32>
    %cst_23 = arith.constant dense<0xFF800000> : vector<8xf32>
    %58 = vector.multi_reduction <maximumf>, %57, %cst_23 [1] : vector<8x16xf32> to vector<8xf32>
    %59 = vector.shape_cast %58 : vector<8xf32> to vector<8x1xf32>
    %60 = vector.broadcast %59 : vector<8x1xf32> to vector<8x16xf32>
    %61 = arith.subf %57, %60 : vector<8x16xf32>
    %62 = math.exp %61 : vector<8x16xf32>
    %cst_24 = arith.constant dense<0.000000e+00> : vector<8xf32>
    %63 = vector.multi_reduction <add>, %62, %cst_24 [1] : vector<8x16xf32> to vector<8xf32>
    %64 = vector.shape_cast %63 : vector<8xf32> to vector<8x1xf32>
    %65 = arith.truncf %62 : vector<8x16xf32> to vector<8x16xbf16>
    %66 = vector.extract_strided_slice %19 {offsets = [0, 16], sizes = [16, 8], strides = [1, 1]} : vector<16x32xbf16> to vector<16x8xbf16>
    %cst_25 = arith.constant dense<0.000000e+00> : vector<8x8xf32>
    %67 = tpu.matmul %65, %66, %cst_25 {dimension_numbers = #tpu.dot_dimension_numbers<[1], [0], [0], [1], [0, 0, 1, 1], [], []>} : vector<8x16xbf16>, vector<16x8xbf16>, vector<8x8xf32> -> vector<8x8xf32>
    %68 = tpu.reciprocal %64 {approx = true} : vector<8x1xf32> -> vector<8x1xf32>
    %69 = vector.broadcast %68 : vector<8x1xf32> to vector<8x8xf32>
    %70 = arith.mulf %67, %69 : vector<8x8xf32>
    %71 = vector.extract_strided_slice %15 {offsets = [0, 24], sizes = [8, 8], strides = [1, 1]} : vector<8x32xbf16> to vector<8x8xbf16>
    %72 = vector.extract_strided_slice %17 {offsets = [0, 24], sizes = [16, 8], strides = [1, 1]} : vector<16x32xbf16> to vector<16x8xbf16>
    "tpu.trace_start"() <{level = 10 : i32, message = "qd,kd->qk"}> : () -> ()
    %cst_26 = arith.constant dense<0.000000e+00> : vector<8x16xf32>
    %73 = tpu.matmul %71, %72, %cst_26 {dimension_numbers = #tpu.dot_dimension_numbers<[1], [1], [0], [0], [0, 0, 1, 0], [], []>} : vector<8x8xbf16>, vector<16x8xbf16>, vector<8x16xf32> -> vector<8x16xf32>
    "tpu.trace_stop"() : () -> ()
    %74 = arith.addf %73, %2 : vector<8x16xf32>
    %cst_27 = arith.constant dense<0xFF800000> : vector<8xf32>
    %75 = vector.multi_reduction <maximumf>, %74, %cst_27 [1] : vector<8x16xf32> to vector<8xf32>
    %76 = vector.shape_cast %75 : vector<8xf32> to vector<8x1xf32>
    %77 = vector.broadcast %76 : vector<8x1xf32> to vector<8x16xf32>
    %78 = arith.subf %74, %77 : vector<8x16xf32>
    %79 = math.exp %78 : vector<8x16xf32>
    %cst_28 = arith.constant dense<0.000000e+00> : vector<8xf32>
    %80 = vector.multi_reduction <add>, %79, %cst_28 [1] : vector<8x16xf32> to vector<8xf32>
    %81 = vector.shape_cast %80 : vector<8xf32> to vector<8x1xf32>
    %82 = arith.truncf %79 : vector<8x16xf32> to vector<8x16xbf16>
    %83 = vector.extract_strided_slice %19 {offsets = [0, 24], sizes = [16, 8], strides = [1, 1]} : vector<16x32xbf16> to vector<16x8xbf16>
    %cst_29 = arith.constant dense<0.000000e+00> : vector<8x8xf32>
    %84 = tpu.matmul %82, %83, %cst_29 {dimension_numbers = #tpu.dot_dimension_numbers<[1], [0], [0], [1], [0, 0, 1, 1], [], []>} : vector<8x16xbf16>, vector<16x8xbf16>, vector<8x8xf32> -> vector<8x8xf32>
    %85 = tpu.reciprocal %81 {approx = true} : vector<8x1xf32> -> vector<8x1xf32>
    %86 = vector.broadcast %85 : vector<8x1xf32> to vector<8x8xf32>
    %87 = arith.mulf %84, %86 : vector<8x8xf32>
    %88 = tpu.concatenate %36, %53, %70, %87 in 1 : vector<8x8xf32>, vector<8x8xf32>, vector<8x8xf32>, vector<8x8xf32> -> vector<8x32xf32>
    %89 = arith.truncf %88 : vector<8x32xf32> to vector<8x32xbf16>
    %c0_30 = arith.constant 0 : index
    %c0_31 = arith.constant 0 : index
    %90 = vector.load %arg8[%c0_30, %c0_31] : memref<32x32xbf16, #tpu.memory_space<vmem>>, vector<32x32xbf16>
    %cst_32 = arith.constant dense<0.000000e+00> : vector<8x32xf32>
    %91 = tpu.matmul %89, %90, %cst_32 {dimension_numbers = #tpu.dot_dimension_numbers<[1], [0], [0], [1], [0, 0, 1, 1], [], []>} : vector<8x32xbf16>, vector<32x32xbf16>, vector<8x32xf32> -> vector<8x32xf32>
    %c0_33 = arith.constant 0 : index
    %c0_34 = arith.constant 0 : index
    %92 = vector.load %arg9[%c0_33, %c0_34] : memref<1x32xf32, #tpu.memory_space<vmem>>, vector<1x32xf32>
    %93 = vector.broadcast %92 : vector<1x32xf32> to vector<8x32xf32>
    %94 = arith.addf %91, %93 : vector<8x32xf32>
    %95 = arith.addf %94, %0 : vector<8x32xf32>
    %cst_35 = arith.constant dense<0.000000e+00> : vector<8xf32>
    %96 = vector.multi_reduction <add>, %95, %cst_35 [1] : vector<8x32xf32> to vector<8xf32>
    %97 = vector.shape_cast %96 : vector<8xf32> to vector<8x1xf32>
    %cst_36 = arith.constant 3.200000e+01 : f32
    %98 = vector.broadcast %cst_36 : f32 to vector<8x1xf32>
    %99 = arith.divf %97, %98 : vector<8x1xf32>
    %100 = vector.broadcast %99 : vector<8x1xf32> to vector<8x32xf32>
    %101 = arith.subf %95, %100 : vector<8x32xf32>
    %102 = arith.mulf %101, %101 : vector<8x32xf32>
    %cst_37 = arith.constant dense<0.000000e+00> : vector<8xf32>
    %103 = vector.multi_reduction <add>, %102, %cst_37 [1] : vector<8x32xf32> to vector<8xf32>
    %104 = vector.shape_cast %103 : vector<8xf32> to vector<8x1xf32>
    %cst_38 = arith.constant 3.200000e+01 : f32
    %105 = vector.broadcast %cst_38 : f32 to vector<8x1xf32>
    %106 = arith.divf %104, %105 : vector<8x1xf32>
    %107 = vector.broadcast %99 : vector<8x1xf32> to vector<8x32xf32>
    %108 = arith.subf %95, %107 : vector<8x32xf32>
    %cst_39 = arith.constant 9.99999996E-13 : f32
    %109 = vector.broadcast %cst_39 : f32 to vector<8x1xf32>
    %110 = arith.addf %106, %109 : vector<8x1xf32>
    %111 = math.rsqrt %110 : vector<8x1xf32>
    %112 = vector.broadcast %111 : vector<8x1xf32> to vector<8x32xf32>
    %113 = arith.mulf %108, %112 : vector<8x32xf32>
    %c0_40 = arith.constant 0 : index
    %c0_41 = arith.constant 0 : index
    %114 = vector.load %arg10[%c0_40, %c0_41] : memref<1x32xf32, #tpu.memory_space<vmem>>, vector<1x32xf32>
    %115 = vector.broadcast %114 : vector<1x32xf32> to vector<8x32xf32>
    %116 = arith.mulf %113, %115 : vector<8x32xf32>
    %c0_42 = arith.constant 0 : index
    %c0_43 = arith.constant 0 : index
    %117 = vector.load %arg11[%c0_42, %c0_43] : memref<1x32xf32, #tpu.memory_space<vmem>>, vector<1x32xf32>
    %118 = vector.broadcast %117 : vector<1x32xf32> to vector<8x32xf32>
    %119 = arith.addf %116, %118 : vector<8x32xf32>
    %c0_44 = arith.constant 0 : index
    %c0_45 = arith.constant 0 : index
    %120 = vector.load %arg12[%c0_44, %c0_45] : memref<8x32xf32, #tpu.memory_space<vmem>>, vector<8x32xf32>
    tpu.vector_store %arg12[%c0_44, %c0_45], %119 {strides = array<i32>} : memref<8x32xf32, #tpu.memory_space<vmem>>, vector<8x32xf32>,
    return
  }
  func.func @transform_0(%arg0: i32) -> (i32, i32) {
    %c0_i32 = arith.constant 0 : i32
    %c0_i32_0 = arith.constant 0 : i32
    return %arg0, %c0_i32 : i32, i32
  }
  func.func @transform_1(%arg0: i32) -> (i32, i32) {
    %c0_i32 = arith.constant 0 : i32
    %c0_i32_0 = arith.constant 0 : i32
    %c0_i32_1 = arith.constant 0 : i32
    return %c0_i32, %c0_i32_0 : i32, i32
  }
  func.func @transform_2(%arg0: i32) -> (i32, i32) {
    %c0_i32 = arith.constant 0 : i32
    %c0_i32_0 = arith.constant 0 : i32
    return %arg0, %c0_i32 : i32, i32
  }
  func.func @transform_3(%arg0: i32) -> (i32, i32) {
    %c0_i32 = arith.constant 0 : i32
    %c0_i32_0 = arith.constant 0 : i32
    %c0_i32_1 = arith.constant 0 : i32
    return %c0_i32, %c0_i32_0 : i32, i32
  }
  func.func @transform_4(%arg0: i32) -> (i32, i32) {
    %c0_i32 = arith.constant 0 : i32
    %c0_i32_0 = arith.constant 0 : i32
    %c0_i32_1 = arith.constant 0 : i32
    return %c0_i32, %c0_i32_0 : i32, i32
  }
  func.func @transform_5(%arg0: i32) -> (i32, i32) {
    %c0_i32 = arith.constant 0 : i32
    %c0_i32_0 = arith.constant 0 : i32
    %c0_i32_1 = arith.constant 0 : i32
    return %c0_i32, %c0_i32_0 : i32, i32
  }
  func.func @transform_6(%arg0: i32) -> (i32, i32) {
    %c0_i32 = arith.constant 0 : i32
    %c0_i32_0 = arith.constant 0 : i32
    %c0_i32_1 = arith.constant 0 : i32
    return %c0_i32, %c0_i32_0 : i32, i32
  }
  func.func @transform_7(%arg0: i32) -> (i32, i32) {
    %c0_i32 = arith.constant 0 : i32
    %c0_i32_0 = arith.constant 0 : i32
    %c0_i32_1 = arith.constant 0 : i32
    return %c0_i32, %c0_i32_0 : i32, i32
  }
  func.func @transform_8(%arg0: i32) -> (i32, i32) {
    %c0_i32 = arith.constant 0 : i32
    %c0_i32_0 = arith.constant 0 : i32
    %c0_i32_1 = arith.constant 0 : i32
    return %c0_i32, %c0_i32_0 : i32, i32
  }
  func.func @transform_9(%arg0: i32) -> (i32, i32) {
    %c0_i32 = arith.constant 0 : i32
    %c0_i32_0 = arith.constant 0 : i32
    %c0_i32_1 = arith.constant 0 : i32
    return %c0_i32, %c0_i32_0 : i32, i32
  }
  func.func @transform_10(%arg0: i32) -> (i32, i32) {
    %c0_i32 = arith.constant 0 : i32
    %c0_i32_0 = arith.constant 0 : i32
    %c0_i32_1 = arith.constant 0 : i32
    return %c0_i32, %c0_i32_0 : i32, i32
  }
  func.func @transform_11(%arg0: i32) -> (i32, i32) {
    %c0_i32 = arith.constant 0 : i32
    %c0_i32_0 = arith.constant 0 : i32
    return %arg0, %c0_i32 : i32, i32
  }
}

</mosaic_0001>

<bundles_post_ra>
// kernel: gatbert_attention.1
= control target key start
LH: loop header
LB: loop body
LE: loop exit
PB: predicated region body
PF: predicated region fallthrough
CT: control target
= control target key end

     0   :  { %s1729_s0 = inlined_call_operand.vmem [shape: f32[16,32], index: 0, kind: input, shape index: {}, may-alias: {0,1}]   ;;  %s1730_s1 = inlined_call_operand.vmem [shape: f32[16,32], index: 1, kind: input, shape index: {}, may-alias: {0,1}]   ;;  %s1731_s2 = inlined_call_operand.vmem [shape: f32[16,16], index: 2, kind: input, shape index: {}]   ;;  %s1732_s3 = inlined_call_operand.vmem [shape: bf16[32,32], index: 3, kind: input, shape index: {}]   ;;  %s1733_s4 = inlined_call_operand.vmem [shape: bf16[32,64], index: 4, kind: input, shape index: {}]   ;;  %s1734_s5 = inlined_call_operand.vmem [shape: f32[1,32], index: 5, kind: input, shape index: {}]   ;;  %s1735_s6 = inlined_call_operand.vmem [shape: f32[1,64], index: 6, kind: input, shape index: {}]   ;;  %s1736_s7 = inlined_call_operand.vmem [shape: bf16[32,32], index: 7, kind: input, shape index: {}]   ;;  %s1737_s8 = inlined_call_operand.vmem [shape: f32[1,32], index: 8, kind: input, shape index: {}]   ;;  %s1738_s9 = inlined_call_operand.vmem [shape: f32[1,32], index: 9, kind: input, shape index: {}]   ;;  %s1739_s10 = inlined_call_operand.vmem [shape: f32[1,32], index: 10, kind: input, shape index: {}]   ;;  %s1740_s11 = inlined_call_operand.hbm [shape: f32[16,32], index: 11, kind: output, shape index: {}]  }
   0x1   :  { %1741 = sst [smem:[#allocation5_spill]] %s1729_s0 }
   0x2   :  { %1742 = sst [smem:[#allocation6_spill]] %s1730_s1 }
   0x3   :  { %1743 = sst [smem:[#allocation7_spill]] %s1731_s2 }
   0x4   :  { %16 = vsyncpa [#allocation3], 0 }
   0x5   :  { %18 = vsyncpa [#allocation3 + $0x1], 0  ;;  %s1514_s17 = smov 0   ;;  %s1516_s18 = smov 0  }
   0x6   :  { %s1518_s19 = smov 0   ;;  %s1520_s20 = smov 0  }
   0x7 LB: > { %s1535_s21 = sadd.s32 4294967295, %s1439_s20   ;;  %s1174_s22 = sadd.s32 4294967294, %s1439_s20   ;;  %s1439_s20 = sphi %s1520_s20, %s1752_s20   ;;  %s1435_s19 = sphi %s1518_s19, %s1751_s19   ;;  %s1431_s18 = sphi %s1516_s18, %s1750_s18   ;;  %s1427_s17 = sphi %s1514_s17, %s1749_s17  }
   0x8   : > { %s1539_s23 = sadd.s32 1, %s1439_s20   ;;  %s272_s24 = sadd.s32 1, %s1435_s19 }
   0x9   : > { %s269_s25 = ssub.s32 %s1439_s20, %s1539_s23  ;;  %p282_p0 = scmp.ne.s32.totalorder %s1435_s19, %s1431_s18 }
   0xa   : > { %p270_p1 = scmp.eq.s32.totalorder %s269_s25, 0  ;;  %p283_p2 = scmp.eq.s32.totalorder %s1535_s21, 1 }
   0xb   : > { %p288_p3 = scmp.ne.s32.totalorder %s1431_s18, %s1427_s17  ;;  %p289_p4 = scmp.eq.s32.totalorder %s1174_s22, 1 }
   0xc   : > { %s1550_s26 = scalar_select %p270_p1, %s1435_s19, %s272_s24  }
   0xd   : > { %p1552_p5 = por %p283_p2, %p282_p0  ;;  %p1556_p6 = por %p289_p4, %p288_p3 }
   0xe   : > { %p1177_p7 = scmp.ge.s32.totalorder %s1439_s20, 1  ;;  %p348_p8 = scmp.lt.s32.totalorder %s1439_s20, 3 }
  0x10   : > { %p349_p9 = pnand %p1177_p7, %p348_p8 }
  0x11   : > { %s1746_s1 = sld [smem:[#allocation6_spill]] (!%p349_p9)  ;;  %p391_p10 = scmp.lt.s32.totalorder (!%p349_p9), %s1535_s21, 1 }
  0x12   : > { %352 = sbr.rel (%p349_p9) target bundleno = 1560 (0x618), region = 64  ;;  %s1747_s0 = sld [smem:[#allocation5_spill]] (!%p349_p9) }
  0x13   : > { %s1443_s30 = smov (!%p349_p9), 112   ;;  %s1444_s14 = smov (!%p349_p9), 120  }
  0x14   : > { %s1445_s15 = smov (!%p349_p9), 104   ;;  %s1748_s2 = sld [smem:[#allocation7_spill]] (!%p349_p9) }
  0x15   : > { %s1448_s25 = smov (!%p349_p9), 72   ;;  %s1449_s29 = smov (!%p349_p9), 88  }
  0x17   : > { %v1355_v0 = vld [vmem:[%s1733_s4 + $0x8] sm:$0xff]   ;;  %v1441_v1 = vmov 0.0   ;;  %v1356_v2 = vld [vmem:[%s1733_s4] sm:$0xff]   ;;  %vm1442_vm0 = vmmov 0   ;;  %s1590_s12 = scalar_select %p391_p10, %s1535_s21, 1  ;;  %vm428_vm1 = vcmask 261120  }
  0x18   : > { %1240 = vmatprep.subr.bf16.mxu1 %v1441_v1  ;;  %1232 = vmatprep.subr.bf16.mxu0 %v1441_v1  ;;  %v1357_v3 = vld [vmem:[%s1732_s3 + $0x8] sm:$0xff]   ;;  %v401_v4 = vld [vmem:[%s1746_s1] sm:$0xff]  ;;  %vm542_vm2 = vcmask 64512   ;;  %vm589_vm3 = vcmask 130048   ;;  %vm988_vm4 = vcmask 195584  }
  0x19   : > { %1241 = vmatpush3.bf16.msra.mxu1 %v1355_v0  ;;  %1244 = vmatprep.mubr.msk.bf16.mxu1 %vm1442_vm0, %v1441_v1  ;;  %v402_v5 = vld [vmem:[%s1746_s1 + $0x8] sm:$0xff]  ;;  %v1358_v6 = vld [vmem:[%s1732_s3] sm:$0xff]   ;;  %s1179_s13 = sshll.u32 %s1590_s12, 3  ;;  %s1446_s12 = smov 96  }
  0x1a   : > { %1242 = vmatprep.subr.bf16.mxu1 %v1441_v1  ;;  %1236 = vmatprep.mubr.msk.bf16.mxu0 %vm1442_vm0, %v1441_v1  ;;  %v472_v7 = vpack.c.bf16 %v402_v5, %v401_v4  ;;  %s394_s16 = scalar_lea.vmem %s1747_s0, %s1179_s13  ;;  %v1185_v11 = vld [vmem:[%s1735_s6] ss:$0 sm:$0xff]  ;;  %s398_s24 = scalar_lea.vmem %s1748_s2, %s1179_s13 }
  0x1b   : > { %1233 = vmatpush3.bf16.msra.mxu0 %v1357_v3  ;;  %v1600_v8 = vld [vmem:[%s394_s16] sm:$0xff]  ;;  %s1447_s13 = smov 80  }
  0x1c   : > { %1234 = vmatprep.subr.bf16.mxu0 %v1441_v1  ;;  %v404_v9 = vpack.c.bf16 %v1600_v8, %v1600_v8  ;;  %v1181_v13 = vld [vmem:[%s1734_s5] ss:$0 sm:$0xff] }
  0x1d   : > { %1243 = vmatpush3.bf16.msra.mxu1 %v1356_v2  ;;  %v403_v35 = vld [vmem:[%s398_s24] sm:$0xff]  ;;  %s1451_s24 = smov 16  }
  0x1e   : > { %1254 = vmatprep.subr.bf16.mxu1 %v1441_v1 }
  0x1f   : > { %1235 = vmatpush3.bf16.msra.mxu0 %v1358_v6 }
  0x20   : > { %1245 = vmatmul.mubr.msk.bf16.vlgmr.msra.gmra.mxu1 %vm428_vm1, %v472_v7  ;;  %1248 = vmatprep.subr.bf16.mxu0 %v1441_v1 }
  0x21   : > { %1256 = vmatprep.mubr.msk.bf16.mxu1 %vm1442_vm0, %v1441_v1 }
  0x22   : > { %1237 = vmatmul.mubr.msk.bf16.vlgmr.msra.gmra.mxu0 %vm428_vm1, %v404_v9 }
  0x23   : > { %1250 = vmatprep.mubr.msk.bf16.mxu0 %vm1442_vm0, %v1441_v1 }
  0xe0   : > { %v533_v10 = vpop.f32.mrf.mxu1 }
  0xe1   : > { %v534_v16 = vadd.f32 %v1185_v11, %v533_v10 }
  0xe2   : > { %v1246_v12 = vpop.f32.mrf.mxu1  ;;  %v466_v14 = vpop.f32.mrf.mxu0 }
  0xe3   : > { %v467_v18 = vadd.f32 %v1181_v13, %v466_v14 }
  0xe4   : > { %v536_v15 = vpop.f32.mrf.mxu1  ;;  %v1238_v19 = vpop.f32.mrf.mxu0 }
  0xe5   : > { %v537_v17 = vadd.f32 %v1185_v11, %v536_v15  ;;  %v540_v23 = vpack.c.bf16 %v467_v18, %v467_v18 }
  0xe6   : > { %v1247_v20 = vpop.f32.mrf.mxu1  ;;  %v469_v22 = vpop.f32.mrf.mxu0 }
  0xe7   : > { %v1616_v21 = vpack.c.bf16 %v537_v17, %v534_v16 }
  0xe8   : > { %v1239_v25 = vpop.f32.mrf.mxu0 }
  0xe9   : > { %760 = vrot.lane.b32.xlu1 %v1616_v21, %s1443_s30  ;;  %652 = vrot.lane.b32.xlu0 %v1616_v21, %s1444_s14  ;;  %v547_v24 = vsel %vm542_vm2, %v1616_v21, 0 }
  0xea   : > { %1249 = vmatpush3.bf16.xpose.msra.mxu0 %v547_v24 }
  0xeb   : > { %1260 = vmatprep.subr.bf16.mxu0 %v1441_v1 }
  0xed   : > { %758 = vrot.lane.b32.xlu1 %v540_v23, %s1443_s30  ;;  %650 = vrot.lane.b32.xlu0 %v540_v23, %s1444_s14 }
  0xf1   : > { %866 = vrot.lane.b32.xlu1 %v540_v23, %s1445_s15  ;;  %868 = vrot.lane.b32.xlu0 %v1616_v21, %s1445_s15  ;;  %s1450_s15 = smov 8  }
  0xf2   : > { %1251 = vmatmul.mubr.msk.bf16.vlgmr.msra.gmra.mxu0 %vm542_vm2, %v540_v23 }
  0xf3   : > { %1262 = vmatprep.mubr.msk.bf16.mxu0 %vm1442_vm0, %v1441_v1 }
 0x15b   : > { %v653_v26 = vpop.permute.xlu0 %652  ;;  %v761_v28 = vpop.permute.xlu1 %760 }
 0x15c   : > { %v658_v27 = vsel %vm542_vm2, %v653_v26, 0  ;;  %v766_v30 = vsel %vm542_vm2, %v761_v28, 0 }
 0x15d   : > { %1261 = vmatpush3.bf16.xpose.msra.mxu0 %v658_v27 }
 0x15e   : > { %1272 = vmatprep.subr.bf16.mxu0 %v1441_v1 }
 0x15f   : > { %v651_v29 = vpop.permute.xlu0 %650  ;;  %v759_v32 = vpop.permute.xlu1 %758 }
 0x163   : > { %v869_v31 = vpop.permute.xlu0 %868  ;;  %v867_v34 = vpop.permute.xlu1 %866 }
 0x164   : > { %1263 = vmatmul.mubr.msk.bf16.vlgmr.msra.gmra.mxu0 %vm542_vm2, %v651_v29  ;;  %v874_v33 = vsel %vm542_vm2, %v869_v31, 0 }
 0x165   : > { %1273 = vmatpush3.bf16.xpose.msra.mxu0 %v766_v30  ;;  %1274 = vmatprep.mubr.msk.bf16.mxu0 %vm1442_vm0, %v1441_v1 }
 0x166   : > { %1284 = vmatprep.subr.bf16.mxu0 %v1441_v1 }
 0x16c   : > { %1275 = vmatmul.mubr.msk.bf16.vlgmr.msra.gmra.mxu0 %vm542_vm2, %v759_v32  ;;  %v1359_v32 = vld [vmem:[%s1736_s7 + $0x8] sm:$0xff]  }
 0x16d   : > { %1285 = vmatpush3.bf16.xpose.msra.mxu0 %v874_v33  ;;  %1286 = vmatprep.mubr.msk.bf16.mxu0 %vm1442_vm0, %v1441_v1 }
 0x16e   : > { %1296 = vmatprep.subr.bf16.mxu0 %v1441_v1 }
 0x174   : > { %1287 = vmatmul.mubr.msk.bf16.vlgmr.msra.gmra.mxu0 %vm542_vm2, %v867_v34 }
 0x175   : > { %1300 = vmatprep.mubr.msk.bf16.mxu0 %vm1442_vm0, %v1441_v1  ;;  %1297 = vmatpush3.bf16.msra.mxu0 %v1359_v32 }
 0x176   : > { %1298 = vmatprep.subr.bf16.mxu0 %v1441_v1 }
 0x1b2   : > { %v583_v36 = vpop.f32.mrf.mxu0 }
 0x1b3   : > { %v584_v37 = vadd.f32 %v583_v36, %v403_v35 }
 0x1b4   : > { %v1252_v38 = vpop.f32.mrf.mxu0 }
 0x1b5   : > { %v590_v39 = vsel %vm589_vm3, %v584_v37, -inf }
 0x1b6   : > { %591 = vmax.xlane.f32.xlu0 %v590_v39  ;;  %v586_v40 = vpop.f32.mrf.mxu0  ;;  %v1360_v39 = vld [vmem:[%s1736_s7] sm:$0xff]  }
 0x1b7   : > { %1299 = vmatpush3.bf16.msra.mxu0 %v1360_v39 }
 0x1b8   : > { %v1253_v41 = vpop.f32.mrf.mxu0 }
 0x224   : > { %v694_v42 = vpop.f32.mrf.mxu0 }
 0x225   : > { %v695_v43 = vadd.f32 %v694_v42, %v403_v35 }
 0x226   : > { %v1264_v44 = vpop.f32.mrf.mxu0 }
 0x227   : > { %v700_v45 = vsel %vm589_vm3, %v695_v43, -inf }
 0x228   : > { %701 = vmax.xlane.f32.xlu1 %v700_v45  ;;  %v697_v46 = vpop.f32.mrf.mxu0 }
 0x22a   : > { %v1265_v47 = vpop.f32.mrf.mxu0 }
 0x22c   : > { %v802_v48 = vpop.f32.mrf.mxu0 }
 0x22d   : > { %v803_v49 = vadd.f32 %v802_v48, %v403_v35 }
 0x22e   : > { %v1276_v50 = vpop.f32.mrf.mxu0 }
 0x22f   : > { %v808_v51 = vsel %vm589_vm3, %v803_v49, -inf }
 0x230   : > { %809 = vmax.xlane.f32.xlu0 %v808_v51  ;;  %v805_v52 = vpop.f32.mrf.mxu0 }
 0x232   : > { %v1277_v53 = vpop.f32.mrf.mxu0 }
 0x234   : > { %v910_v54 = vpop.f32.mrf.mxu0 }
 0x235   : > { %v911_v55 = vadd.f32 %v910_v54, %v403_v35 }
 0x236   : > { %v1288_v56 = vpop.f32.mrf.mxu0 }
 0x237   : > { %v916_v57 = vsel %vm589_vm3, %v911_v55, -inf }
 0x238   : > { %917 = vmax.xlane.f32.xlu0 %v916_v57  ;;  %v913_v58 = vpop.f32.mrf.mxu0 }
 0x239   : > { %601 = vrot.lane.b32.xlu1 %v1616_v21, %s1446_s12  ;;  %s1452_s12 = smov 24  }
 0x23a   : > { %v1289_v59 = vpop.f32.mrf.mxu0 }
 0x23d   : > { %818 = vrot.lane.b32.xlu1 %v1616_v21, %s1447_s13 }
 0x23f   : > { %v592_v60 = vpop.xlane.xlu0 %591 }
 0x240   : > { %v593_v61 = vsub.f32 %v584_v37, %v592_v60 }
 0x241   : > { %926 = vrot.lane.b32.xlu1 %v1616_v21, %s1448_s25 }
 0x242   : > { %v594_v62 = vmul.f32 1.442695, %v593_v61 }
 0x244   : > { %1361 = vpow2.f32 %v594_v62  ;;  %v1197_v62 = vld [vmem:[%s1737_s8] ss:$0 sm:$0xff] }
 0x24e   : > { %710 = vrot.lane.b32.xlu0 %v1616_v21, %s1449_s29  ;;  %s388_s29 = sand.u32 1, %s1431_s18  }
 0x24f   : > { %s1178_s30 = sshll.u32 %s388_s29, 3  ;;  %s1090_s2 = scalar_lea.sflag [#allocation3], %s388_s29 }
 0x251   : > { %v1362_v2 = vpop.eup %1361 }
 0x252   : > { %v599_v5 = vpack.c.bf16 %v1362_v2, %v1362_v2  ;;  %v596_v25 = vsel %vm589_vm3, %v1362_v2, 0.0 }
 0x2b1   : > { %v702_v63 = vpop.xlane.xlu1 %701 }
 0x2b2   : > { %v703_v0 = vsub.f32 %v695_v43, %v702_v63 }
 0x2b4   : > { %v704_v3 = vmul.f32 1.442695, %v703_v0 }
 0x2b5   : > { %v602_v4 = vpop.permute.xlu1 %601 }
 0x2b6   : > { %1363 = vpow2.f32 %v704_v3  ;;  %1255 = vmatpush3.bf16.msra.mxu1 %v602_v4 }
 0x2b7   : > { %1266 = vmatprep.subr.bf16.mxu1 %v1441_v1 }
 0x2b9   : > { %1257 = vmatmul.mubr.msk.bf16.vlgmr.msra.gmra.mxu1 %vm589_vm3, %v599_v5  ;;  %v810_v6 = vpop.xlane.xlu0 %809  ;;  %v819_v17 = vpop.permute.xlu1 %818 }
 0x2ba   : > { %v811_v7 = vsub.f32 %v803_v49, %v810_v6  ;;  %1268 = vmatprep.mubr.msk.bf16.mxu1 %vm1442_vm0, %v1441_v1 }
 0x2bc   : > { %v812_v9 = vmul.f32 1.442695, %v811_v7 }
 0x2bd   : > { %v927_v21 = vpop.permute.xlu1 %926 }
 0x2be   : > { %1365 = vpow2.f32 %v812_v9 }
 0x2c1   : > { %v918_v10 = vpop.xlane.xlu0 %917 }
 0x2c2   : > { %v919_v11 = vsub.f32 %v911_v55, %v918_v10 }
 0x2c3   : > { %v1364_v12 = vpop.eup %1363 }
 0x2c4   : > { %v920_v13 = vmul.f32 1.442695, %v919_v11  ;;  %v706_v14 = vsel %vm589_vm3, %v1364_v12, 0.0  ;;  %v709_v16 = vpack.c.bf16 %v1364_v12, %v1364_v12 }
 0x2c5   : > { %707 = vadd.xlane.f32.xlu0 %v706_v14  ;;  %v711_v15 = vpop.permute.xlu0 %710 }
 0x2c6   : > { %1367 = vpow2.f32 %v920_v13  ;;  %1267 = vmatpush3.bf16.msra.mxu1 %v711_v15 }
 0x2c7   : > { %1278 = vmatprep.subr.bf16.mxu1 %v1441_v1 }
 0x2c9   : > { %1269 = vmatmul.mubr.msk.bf16.vlgmr.msra.gmra.mxu1 %vm589_vm3, %v709_v16  ;;  %v1201_v16 = vld [vmem:[%s1738_s9] ss:$0 sm:$0xff] }
 0x2ca   : > { %1279 = vmatpush3.bf16.msra.mxu1 %v819_v17  ;;  %1280 = vmatprep.mubr.msk.bf16.mxu1 %vm1442_vm0, %v1441_v1 }
 0x2cb   : > { %v1366_v18 = vpop.eup %1365  ;;  %1290 = vmatprep.subr.bf16.mxu1 %v1441_v1 }
 0x2cc   : > { %v814_v19 = vsel %vm589_vm3, %v1366_v18, 0.0  ;;  %v817_v20 = vpack.c.bf16 %v1366_v18, %v1366_v18  ;;  %v1202_v18 = vld [vmem:[%s1739_s10] ss:$0 sm:$0xff] }
 0x2cd   : > { %815 = vadd.xlane.f32.xlu1 %v814_v19 }
 0x2d1   : > { %1281 = vmatmul.mubr.msk.bf16.vlgmr.msra.gmra.mxu1 %vm589_vm3, %v817_v20 }
 0x2d2   : > { %1291 = vmatpush3.bf16.msra.mxu1 %v927_v21  ;;  %1292 = vmatprep.mubr.msk.bf16.mxu1 %vm1442_vm0, %v1441_v1 }
 0x2d3   : > { %v1368_v22 = vpop.eup %1367 }
 0x2d4   : > { %v922_v23 = vsel %vm589_vm3, %v1368_v22, 0.0  ;;  %v925_v24 = vpack.c.bf16 %v1368_v22, %v1368_v22 }
 0x2d5   : > { %923 = vadd.xlane.f32.xlu0 %v922_v23 }
 0x2d9   : > { %597 = vadd.xlane.f32.xlu0 %v596_v25  ;;  %1293 = vmatmul.mubr.msk.bf16.vlgmr.msra.gmra.mxu1 %vm589_vm3, %v925_v24 }
 0x34e   : > { %v708_v26 = vpop.xlane.xlu0 %707 }
 0x34f   : > { %1369 = vrcp.f32 %v708_v26 }
 0x356   : > { %v816_v31 = vpop.xlane.xlu1 %815 }
 0x357   : > { %1371 = vrcp.f32 %v816_v31 }
 0x35c   : > { %v1370_v33 = vpop.eup %1369 }
 0x35e   : > { %v924_v34 = vpop.xlane.xlu0 %923 }
 0x35f   : > { %1373 = vrcp.f32 %v924_v34 }
 0x362   : > { %v598_v52 = vpop.xlane.xlu0 %597 }
 0x363   : > { %1375 = vrcp.f32 %v598_v52 }
 0x364   : > { %v1372_v41 = vpop.eup %1371 }
 0x36c   : > { %v1374_v1 = vpop.eup %1373 }
 0x370   : > { %v1376_v53 = vpop.eup %1375 }
 0x379   : > { %v641_v27 = vpop.f32.mrf.mxu1 }
 0x37a   : > { %v648_v55 = vmul.f32 %v1376_v53, %v641_v27 }
 0x37b   : > { %v1258_v28 = vpop.f32.mrf.mxu1 }
 0x37d   : > { %v644_v29 = vpop.f32.mrf.mxu1 }
 0x37f   : > { %v1259_v30 = vpop.f32.mrf.mxu1 }
 0x389   : > { %v750_v35 = vpop.f32.mrf.mxu1 }
 0x38a   : > { %v757_v36 = vmul.f32 %v1370_v33, %v750_v35 }
 0x38b   : > { %v1270_v37 = vpop.f32.mrf.mxu1 }
 0x38c   : > { %975 = vrot.lane.b32.xlu1 %v757_v36, %s1450_s15  ;;  %s1453_s15 = smov [#allocation2]  }
 0x38d   : > { %v753_v38 = vpop.f32.mrf.mxu1  ;;  %s1383_s16 = sshll.u32 %s1453_s15, 4  ;;  %s1384_s16 = int_to_ptr.vmem [resolvable:$false] %s1383_s16 }
 0x38f   : > { %v1271_v40 = vpop.f32.mrf.mxu1 }
 0x391   : > { %v858_v42 = vpop.f32.mrf.mxu1 }
 0x392   : > { %v865_v43 = vmul.f32 %v1372_v41, %v858_v42 }
 0x393   : > { %v1282_v44 = vpop.f32.mrf.mxu1 }
 0x394   : > { %979 = vrot.lane.b32.xlu0 %v865_v43, %s1451_s24  ;;  %s1204_s24 = sshll.u32 %s1535_s21, 7  ;;  %s1385_s21 = scalar_lea.vmem %s1384_s16, 256 }
 0x395   : > { %v861_v45 = vpop.f32.mrf.mxu1  ;;  %s1101_s1 = scalar_lea.hbm %s1740_s11, %s1204_s24 }
 0x397   : > { %v1283_v46 = vpop.f32.mrf.mxu1 }
 0x399   : > { %v966_v47 = vpop.f32.mrf.mxu1 }
 0x39a   : > { %v973_v48 = vmul.f32 %v1374_v1, %v966_v47 }
 0x39b   : > { %v1294_v49 = vpop.f32.mrf.mxu1 }
 0x39c   : > { %983 = vrot.lane.b32.xlu1 %v973_v48, %s1452_s12  ;;  %s390_s12 = scalar_lea.vmem [#allocation2], %s1178_s30 }
 0x39d   : > { %v969_v50 = vpop.f32.mrf.mxu1  ;;  %s1103_s13 = sshll.u32 %s390_s12, 4  ;;  %s1104_s13 = int_to_ptr.vmem [resolvable:$true] %s1103_s13 }
 0x39e   : > { %s1379_s14 = scalar_lea.vmem %s1104_s13, 128  ;;  %p1386_p0 = scmp.lt.s32.totalorder %s1104_s13, %s1384_s16 }
 0x39f   : > { %v1295_v51 = vpop.f32.mrf.mxu1  ;;  %p1380_p11 = scmp.ne.s32.totalorder %s1104_s13, %s1379_s14  ;;  %p1387_p1 = scmp.lt.s32.totalorder %s1385_s21, %s1379_s14 }
 0x3a1   : > { %p1381_p12 = pnand %p1380_p11, %p1552_p5  ;;  %p1388_p2 = por %p1387_p1, %p1386_p0 }
 0x3a3   : > { %p1382_p13 = pneg %p1381_p12 }
 0x3a5   : > { %p1389_p3 = pnand %p1388_p2, %p1382_p13 }
 0x3fe   : > { %v976_v54 = vpop.permute.xlu1 %975 }
 0x3ff   : > { %v986_v57 = vsel %vm542_vm2, %v648_v55, %v976_v54 }
 0x406   : > { %v980_v56 = vpop.permute.xlu0 %979 }
 0x407   : > { %v987_v58 = vsel %vm589_vm3, %v986_v57, %v980_v56 }
 0x40e   : > { %v984_v59 = vpop.permute.xlu1 %983 }
 0x40f   : > { %v989_v60 = vsel %vm988_vm4, %v987_v58, %v984_v59 }
 0x410   : > { %v990_v61 = vpack.c.bf16 %v989_v60, %v989_v60 }
 0x412   : > { %1301 = vmatmul.mubr.msk.bf16.vlgmr.msra.gmra.mxu0 %vm428_vm1, %v990_v61 }
 0x4d2   : > { %v1051_v63 = vpop.f32.mrf.mxu0 }
 0x4d3   : > { %v1052_v0 = vadd.f32 %v1197_v62, %v1051_v63 }
 0x4d4   : > { %v1302_v2 = vpop.f32.mrf.mxu0 }
 0x4d5   : > { %v1057_v3 = vadd.f32 %v1052_v0, %v1600_v8 }
 0x4d6   : > { %v1054_v4 = vpop.f32.mrf.mxu0 }
 0x4d7   : > { %v1058_v5 = vsel %vm428_vm1, %v1057_v3, 0.0 }
 0x4d8   : > { %1059 = vadd.xlane.f32.xlu1 %v1058_v5  ;;  %v1303_v6 = vpop.f32.mrf.mxu0 }
 0x561   : > { %v1060_v7 = vpop.xlane.xlu1 %1059 }
 0x562   : > { %v1062_v9 = vmul.f32 0.03125, %v1060_v7 }
 0x564   : > { %v1063_v10 = vsub.f32 %v1057_v3, %v1062_v9 }
 0x566   : > { %v1064_v11 = vmul.f32 %v1063_v10, %v1063_v10 }
 0x568   : > { %v1065_v12 = vsel %vm428_vm1, %v1064_v11, 0.0 }
 0x569   : > { %1066 = vadd.xlane.f32.xlu0 %v1065_v12 }
 0x5f2   : > { %v1067_v13 = vpop.xlane.xlu0 %1066 }
 0x5f3   : > { %v1068_v14 = vmul.f32 0.03125, %v1067_v13 }
 0x5f5   : > { %v1069_v15 = vadd.f32 1e-12, %v1068_v14 }
 0x5f7   : > { %1377 = vrsqrt.f32 %v1069_v15 }
 0x604   : > { %v1378_v8 = vpop.eup %1377 }
 0x605   : > { %v1071_v17 = vmul.f32 %v1378_v8, %v1063_v10 }
 0x607   : > { %v1079_v19 = vmul.f32 %v1201_v16, %v1071_v17 }
 0x609   : > { %v1087_v20 = vadd.f32 %v1202_v18, %v1079_v19 }
 0x60b   : > { %1088 = vst.msk [vmem:[%s390_s12] sm:$0xff] %vm428_vm1, %v1087_v20 }
 0x60c   : > { %1392 = shalt.err (!%p1389_p3)
}
 0x60d   : > { %s1393_s0 = scalar_lea.hbm %s1101_s1, 128  ;;  %s1397_s22 = scalar_lea.hbm %s1740_s11, 256 }
 0x60e   : > { %p1394_p4 = scmp.ne.s32.totalorder %s1101_s1, %s1393_s0  ;;  %p1398_p9 = scmp.lt.s32.totalorder %s1101_s1, %s1740_s11 }
 0x60f   : > { %p1399_p10 = scmp.lt.s32.totalorder %s1397_s22, %s1393_s0 }
 0x610   : > { %p1395_p7 = pnand %p1394_p4, %p1552_p5 }
 0x611   : > { %p1400_p11 = por %p1399_p10, %p1398_p9 }
 0x612   : > { %p1396_p8 = pneg %p1395_p7 }
 0x614   : > { %p1401_p12 = pnand %p1400_p11, %p1396_p8 }
 0x616   : > { %1404 = shalt.err (!%p1401_p12)
}
 0x617   : > { %1304 = dma.vmem_to_hbm [thread:$0]  (%p1552_p5), %s1104_s13, 128, %s1101_s1, %s1090_s2  }
 0x618 PF: > { %p1310_p13 = scmp.ge.s32.totalorder %s1439_s20, 2  ;;  %s1115_s25 = sand.u32 1, %s1427_s17  }
 0x619   : > { %s1116_s14 = scalar_lea.sflag [#allocation3], %s1115_s25 }
 0x61a   : > { %p1307_p0 = pnand %p1310_p13, %p1556_p6 }
 0x61c   : > { %p1308_p1 = pneg %p1307_p0 }
 0x61e   : > { %1422 = dma.done.wait (%p1308_p1), %s1116_s14, 128  }
 0x61f   : > { %1424 = vsyncadd (%p1308_p1), %s1116_s14, 4294967168  ;;  %p21_p2 = scmp.ge.s32.totalorder %s1539_s23, 4   ;;  %s1749_s17 = smov %s1431_s18 }
 0x620   : > { %s1750_s18 = smov %s1435_s19  ;;  %s1751_s19 = smov %s1550_s26 }
 0x621   : > { %s1752_s20 = smov %s1539_s23  ;;  %23 = sbr.rel (!%p21_p2) target bundleno = 7 (0x7), region = 102 }
 0x626   :  { %1121 = vsyncpa [#allocation3], 1 }
 0x627   :  { %1123 = vsyncpa [#allocation3 + $0x1], 1 }

</bundles_post_ra>
